<compile_context>
chip_gen: v7x
topology: tpu7x:2x2x1
jax: 0.10.0
libtpu: 0.0.40
codegen_flags: <defaults>
</compile_context>

<pallas_src>
import functools

import jax
import jax.numpy as jnp
from jax.experimental import pallas as pl
from jax.experimental.pallas import tpu as pltpu


def _adapter_kernel(scale, eps, add_residual, separate_residual, *refs):
    if separate_residual:
        (x_ref, res_ref, gamma_ref, beta_ref,
         wd_ref, bd_ref, wu_ref, bu_ref, o_ref) = refs
    else:
        (x_ref, gamma_ref, beta_ref,
         wd_ref, bd_ref, wu_ref, bu_ref, o_ref) = refs
        res_ref = x_ref  # residual defaults to the input tile (read once)

    x = x_ref[...]
    xf = x.astype(jnp.float32)

    # --- LayerNorm over the feature axis (adapter_layernorm_option='in'),
    #     statistics in f32 ---
    mean = jnp.mean(xf, axis=-1, keepdims=True)
    centered = xf - mean
    var = jnp.mean(centered * centered, axis=-1, keepdims=True)
    xn = centered * jax.lax.rsqrt(var + eps)
    xn = xn * gamma_ref[...].astype(jnp.float32) + beta_ref[...].astype(jnp.float32)

    # --- down_proj + bias + ReLU ---
    # Matmul operands in the weight's native dtype (bf16-friendly on MXU);
    # accumulation stays f32 via preferred_element_type.
    down = jnp.dot(xn.astype(wd_ref.dtype), wd_ref[...],
                   preferred_element_type=jnp.float32)
    down = jnp.maximum(down + bd_ref[...].astype(jnp.float32), 0.0)

    # (dropout with p=0.0 / eval mode is identity)

    # --- up_proj + bias, scale, optional residual ---
    up = jnp.dot(down.astype(wu_ref.dtype), wu_ref[...],
                 preferred_element_type=jnp.float32)
    up = (up + bu_ref[...].astype(jnp.float32)) * scale

    if add_residual:
        up = up + res_ref[...].astype(jnp.float32)

    o_ref[...] = up.astype(o_ref.dtype)


def _round_up(a, m):
    return ((a + m - 1) // m) * m


def adapter_forward(x, params, *, scale=1.0, eps=1e-5, add_residual=True,
                    residual=None, tm=256):
    """x: (B, N, D). params: dict of gamma, beta, w_down, b_down, w_up, b_up.
    Returns (B, N, D)."""
    B, N, D = x.shape
    bn = params["w_down"].shape[1]
    M = B * N

    separate_residual = bool(add_residual) and (residual is not None)

    # --- choose the row tile ---
    tm_eff = max(8, _round_up(min(int(tm), _round_up(M, 8)), 8))
    # keep >= 2 grid steps when possible so megacore (v7x) can shard them
    if pl.cdiv(M, tm_eff) < 2 and M > 8:
        tm_eff = max(8, _round_up(pl.cdiv(M, 2), 8))

    # --- VMEM budget: 2x-buffered row tiles + (conservatively 2x) weights ---
    itemsize = jnp.dtype(x.dtype).itemsize
    w_bytes = sum(int(params[k].size) * jnp.dtype(params[k].dtype).itemsize
                  for k in ("gamma", "beta", "w_down", "b_down", "w_up", "b_up"))
    n_row_streams = 2 + (1 if separate_residual else 0)   # x, out, (residual)
    budget = 48 << 20                                      # safe on v7x's 64 MiB
    while tm_eff > 8:
        est = n_row_streams * 2 * tm_eff * D * itemsize + 2 * w_bytes
        if est <= budget:
            break
        tm_eff = max(8, _round_up(tm_eff // 2, 8))
    est = n_row_streams * 2 * tm_eff * D * itemsize + 2 * w_bytes
    vmem_limit = int(min(64 << 20, max(2 * est + (4 << 20), 32 << 20)))

    # --- pad rows up to a multiple of the tile (padded rows are discarded) ---
    M_pad = _round_up(M, tm_eff)
    x2 = x.reshape(M, D)
    if M_pad != M:
        x2 = jnp.pad(x2, ((0, M_pad - M), (0, 0)))

    inputs = [x2]
    row_spec = pl.BlockSpec((tm_eff, D), lambda i: (i, 0))
    in_specs = [row_spec]
    if separate_residual:
        r2 = residual.reshape(M, D)
        if M_pad != M:
            r2 = jnp.pad(r2, ((0, M_pad - M), (0, 0)))
        inputs.append(r2)
        in_specs.append(pl.BlockSpec((tm_eff, D), lambda i: (i, 0)))

    gamma = params["gamma"].reshape(1, D)
    beta = params["beta"].reshape(1, D)
    w_down = params["w_down"]                 # (D, bn)
    b_down = params["b_down"].reshape(1, bn)
    w_up = params["w_up"]                     # (bn, D)
    b_up = params["b_up"].reshape(1, D)
    inputs += [gamma, beta, w_down, b_down, w_up, b_up]

    # Constant index_map -> these blocks are only DMA'd once by the pipeline.
    full = lambda shp: pl.BlockSpec(shp, lambda i: (0, 0))
    in_specs += [full((1, D)), full((1, D)), full((D, bn)), full((1, bn)),
                 full((bn, D)), full((1, D))]

    kernel = functools.partial(_adapter_kernel, float(scale), float(eps),
                               bool(add_residual), separate_residual)

    out2 = pl.pallas_call(
        kernel,
        out_shape=jax.ShapeDtypeStruct((M_pad, D), x.dtype),
        grid_spec=pltpu.PrefetchScalarGridSpec(
            num_scalar_prefetch=0,
            grid=(M_pad // tm_eff,),
            in_specs=in_specs,
            out_specs=row_spec,
        ),
        compiler_params=pltpu.CompilerParams(
            dimension_semantics=("parallel",),
            vmem_limit_bytes=vmem_limit),
    )(*inputs)

    if M_pad != M:
        out2 = out2[:M]
    return out2.reshape(B, N, D)


def init_adapter_params(key, d_model, bottleneck):
    # Deterministic synthetic init (the 'lora' init in the PyTorch module
    # zero-inits up_proj; use nonzero random weights so the matmul path is
    # actually exercised).
    k1, k2 = jax.random.split(key)
    bound = 1.0 / (d_model ** 0.5)
    w_down = jax.random.uniform(k1, (d_model, bottleneck), jnp.float32,
                                -bound, bound)
    w_up = jax.random.uniform(k2, (bottleneck, d_model), jnp.float32,
                              -0.02, 0.02)
    return {
        "gamma": jnp.ones((d_model,), jnp.float32),
        "beta": jnp.zeros((d_model,), jnp.float32),
        "w_down": w_down,
        "b_down": jnp.zeros((bottleneck,), jnp.float32),
        "w_up": w_up,
        "b_up": jnp.zeros((d_model,), jnp.float32),
    }


def _reference(x, params, scale, eps, add_residual=True, residual=None):
    residual = x if residual is None else residual
    mean = jnp.mean(x, axis=-1, keepdims=True)
    var = jnp.mean((x - mean) ** 2, axis=-1, keepdims=True)
    xn = (x - mean) / jnp.sqrt(var + eps) * params["gamma"] + params["beta"]
    down = jnp.maximum(xn @ params["w_down"] + params["b_down"], 0.0)
    up = (down @ params["w_up"] + params["b_up"]) * scale
    return up + residual if add_residual else up


if __name__ == "__main__":
    B, N, D, BN = 2, 8, 32, 16   # batch, seq, d_model, bottleneck
    key = jax.random.PRNGKey(0)
    kx, kp = jax.random.split(key)
    x = jax.random.normal(kx, (B, N, D), jnp.float32)
    params = init_adapter_params(kp, D, BN)

    # default path: residual = x, add_residual=True
    out = adapter_forward(x, params, scale=1.0, eps=1e-5, add_residual=True)
    out = jax.block_until_ready(out)
    ref = _reference(x, params, 1.0, 1e-5, add_residual=True)
    assert out.shape == (B, N, D)
    assert jnp.allclose(out, ref, atol=1e-5, rtol=1e-5), "mismatch (residual)"

    # no-residual path (single kernel call, residual add compiled out)
    out_nr = adapter_forward(x, params, scale=1.0, eps=1e-5, add_residual=False)
    out_nr = jax.block_until_ready(out_nr)
    ref_nr = _reference(x, params, 1.0, 1e-5, add_residual=False)
    assert jnp.allclose(out_nr, ref_nr, atol=1e-5, rtol=1e-5), "mismatch (no res)"

    # explicit residual path
    res = 0.5 * x
    out_r = adapter_forward(x, params, scale=1.0, eps=1e-5, add_residual=True,
                            residual=res)
    out_r = jax.block_until_ready(out_r)
    ref_r = _reference(x, params, 1.0, 1e-5, add_residual=True, residual=res)
    assert jnp.allclose(out_r, ref_r, atol=1e-5, rtol=1e-5), "mismatch (ext res)"

    print("KERNEL_OK")
</pallas_src>

<mosaic_0001>
module attributes {stable_mosaic.version = 11 : i64} {
  func.func @_adapter_kernel(%arg0: i32, %arg1: memref<8x32xf32, #tpu.memory_space<vmem>>, %arg2: memref<1x32xf32, #tpu.memory_space<vmem>>, %arg3: memref<1x32xf32, #tpu.memory_space<vmem>>, %arg4: memref<32x16xf32, #tpu.memory_space<vmem>>, %arg5: memref<1x16xf32, #tpu.memory_space<vmem>>, %arg6: memref<16x32xf32, #tpu.memory_space<vmem>>, %arg7: memref<1x32xf32, #tpu.memory_space<vmem>>, %arg8: memref<8x32xf32, #tpu.memory_space<vmem>>) attributes {dimension_semantics = [#tpu.dimension_semantics<parallel>], iteration_bounds = array<i64: 2>, scalar_prefetch = 0 : i64, scratch_operands = 0 : i64, tpu.core_type = #tpu.core_type<tc>, window_params = [{transform_indices = @transform_0, window_bounds = array<i64: 8, 32>}, {pipeline_mode = #tpu.pipeline_mode<synchronous>, transform_indices = @transform_1, window_bounds = array<i64: 1, 32>}, {pipeline_mode = #tpu.pipeline_mode<synchronous>, transform_indices = @transform_2, window_bounds = array<i64: 1, 32>}, {pipeline_mode = #tpu.pipeline_mode<synchronous>, transform_indices = @transform_3, window_bounds = array<i64: 32, 16>}, {pipeline_mode = #tpu.pipeline_mode<synchronous>, transform_indices = @transform_4, window_bounds = array<i64: 1, 16>}, {pipeline_mode = #tpu.pipeline_mode<synchronous>, transform_indices = @transform_5, window_bounds = array<i64: 16, 32>}, {pipeline_mode = #tpu.pipeline_mode<synchronous>, transform_indices = @transform_6, window_bounds = array<i64: 1, 32>}, {transform_indices = @transform_7, window_bounds = array<i64: 8, 32>}]} {
    %c0 = arith.constant 0 : index
    %c0_0 = arith.constant 0 : index
    %0 = vector.load %arg1[%c0, %c0_0] : memref<8x32xf32, #tpu.memory_space<vmem>>, vector<8x32xf32>
    %cst = arith.constant dense<0.000000e+00> : vector<8xf32>
    %1 = vector.multi_reduction <add>, %0, %cst [1] : vector<8x32xf32> to vector<8xf32>
    %2 = vector.shape_cast %1 : vector<8xf32> to vector<8x1xf32>
    %cst_1 = arith.constant 3.200000e+01 : f32
    %3 = vector.broadcast %cst_1 : f32 to vector<8x1xf32>
    %4 = arith.divf %2, %3 : vector<8x1xf32>
    %5 = vector.broadcast %4 : vector<8x1xf32> to vector<8x32xf32>
    %6 = arith.subf %0, %5 : vector<8x32xf32>
    %7 = arith.mulf %6, %6 : vector<8x32xf32>
    %cst_2 = arith.constant dense<0.000000e+00> : vector<8xf32>
    %8 = vector.multi_reduction <add>, %7, %cst_2 [1] : vector<8x32xf32> to vector<8xf32>
    %9 = vector.shape_cast %8 : vector<8xf32> to vector<8x1xf32>
    %cst_3 = arith.constant 3.200000e+01 : f32
    %10 = vector.broadcast %cst_3 : f32 to vector<8x1xf32>
    %11 = arith.divf %9, %10 : vector<8x1xf32>
    %cst_4 = arith.constant 9.99999974E-6 : f32
    %12 = vector.broadcast %cst_4 : f32 to vector<8x1xf32>
    %13 = arith.addf %11, %12 : vector<8x1xf32>
    %14 = math.rsqrt %13 : vector<8x1xf32>
    %15 = vector.broadcast %14 : vector<8x1xf32> to vector<8x32xf32>
    %16 = arith.mulf %6, %15 : vector<8x32xf32>
    %c0_5 = arith.constant 0 : index
    %c0_6 = arith.constant 0 : index
    %17 = vector.load %arg2[%c0_5, %c0_6] : memref<1x32xf32, #tpu.memory_space<vmem>>, vector<1x32xf32>
    %18 = vector.broadcast %17 : vector<1x32xf32> to vector<8x32xf32>
    %19 = arith.mulf %16, %18 : vector<8x32xf32>
    %c0_7 = arith.constant 0 : index
    %c0_8 = arith.constant 0 : index
    %20 = vector.load %arg3[%c0_7, %c0_8] : memref<1x32xf32, #tpu.memory_space<vmem>>, vector<1x32xf32>
    %21 = vector.broadcast %20 : vector<1x32xf32> to vector<8x32xf32>
    %22 = arith.addf %19, %21 : vector<8x32xf32>
    %c0_9 = arith.constant 0 : index
    %c0_10 = arith.constant 0 : index
    %23 = vector.load %arg4[%c0_9, %c0_10] : memref<32x16xf32, #tpu.memory_space<vmem>>, vector<32x16xf32>
    %cst_11 = arith.constant dense<0.000000e+00> : vector<8x16xf32>
    %24 = tpu.matmul %22, %23, %cst_11 {dimension_numbers = #tpu.dot_dimension_numbers<[1], [0], [0], [1], [0, 0, 1, 1], [], []>} : vector<8x32xf32>, vector<32x16xf32>, vector<8x16xf32> -> vector<8x16xf32>
    %c0_12 = arith.constant 0 : index
    %c0_13 = arith.constant 0 : index
    %25 = vector.load %arg5[%c0_12, %c0_13] : memref<1x16xf32, #tpu.memory_space<vmem>>, vector<1x16xf32>
    %26 = vector.broadcast %25 : vector<1x16xf32> to vector<8x16xf32>
    %27 = arith.addf %24, %26 : vector<8x16xf32>
    %cst_14 = arith.constant 0.000000e+00 : f32
    %28 = vector.broadcast %cst_14 : f32 to vector<8x16xf32>
    %29 = arith.maximumf %27, %28 : vector<8x16xf32>
    %c0_15 = arith.constant 0 : index
    %c0_16 = arith.constant 0 : index
    %30 = vector.load %arg6[%c0_15, %c0_16] : memref<16x32xf32, #tpu.memory_space<vmem>>, vector<16x32xf32>
    %cst_17 = arith.constant dense<0.000000e+00> : vector<8x32xf32>
    %31 = tpu.matmul %29, %30, %cst_17 {dimension_numbers = #tpu.dot_dimension_numbers<[1], [0], [0], [1], [0, 0, 1, 1], [], []>} : vector<8x16xf32>, vector<16x32xf32>, vector<8x32xf32> -> vector<8x32xf32>
    %c0_18 = arith.constant 0 : index
    %c0_19 = arith.constant 0 : index
    %32 = vector.load %arg7[%c0_18, %c0_19] : memref<1x32xf32, #tpu.memory_space<vmem>>, vector<1x32xf32>
    %33 = vector.broadcast %32 : vector<1x32xf32> to vector<8x32xf32>
    %34 = arith.addf %31, %33 : vector<8x32xf32>
    %cst_20 = arith.constant 1.000000e+00 : f32
    %35 = vector.broadcast %cst_20 : f32 to vector<8x32xf32>
    %36 = arith.mulf %34, %35 : vector<8x32xf32>
    %c0_21 = arith.constant 0 : index
    %c0_22 = arith.constant 0 : index
    %37 = vector.load %arg1[%c0_21, %c0_22] : memref<8x32xf32, #tpu.memory_space<vmem>>, vector<8x32xf32>
    %38 = arith.addf %36, %37 : vector<8x32xf32>
    %c0_23 = arith.constant 0 : index
    %c0_24 = arith.constant 0 : index
    %39 = vector.load %arg8[%c0_23, %c0_24] : memref<8x32xf32, #tpu.memory_space<vmem>>, vector<8x32xf32>
    tpu.vector_store %arg8[%c0_23, %c0_24], %38 {strides = array<i32>} : memref<8x32xf32, #tpu.memory_space<vmem>>, vector<8x32xf32>,
    return
  }
  func.func @transform_0(%arg0: i32) -> (i32, i32) {
    %c0_i32 = arith.constant 0 : i32
    %c0_i32_0 = arith.constant 0 : i32
    return %arg0, %c0_i32 : i32, i32
  }
  func.func @transform_1(%arg0: i32) -> (i32, i32) {
    %c0_i32 = arith.constant 0 : i32
    %c0_i32_0 = arith.constant 0 : i32
    %c0_i32_1 = arith.constant 0 : i32
    return %c0_i32, %c0_i32_0 : i32, i32
  }
  func.func @transform_2(%arg0: i32) -> (i32, i32) {
    %c0_i32 = arith.constant 0 : i32
    %c0_i32_0 = arith.constant 0 : i32
    %c0_i32_1 = arith.constant 0 : i32
    return %c0_i32, %c0_i32_0 : i32, i32
  }
  func.func @transform_3(%arg0: i32) -> (i32, i32) {
    %c0_i32 = arith.constant 0 : i32
    %c0_i32_0 = arith.constant 0 : i32
    %c0_i32_1 = arith.constant 0 : i32
    return %c0_i32, %c0_i32_0 : i32, i32
  }
  func.func @transform_4(%arg0: i32) -> (i32, i32) {
    %c0_i32 = arith.constant 0 : i32
    %c0_i32_0 = arith.constant 0 : i32
    %c0_i32_1 = arith.constant 0 : i32
    return %c0_i32, %c0_i32_0 : i32, i32
  }
  func.func @transform_5(%arg0: i32) -> (i32, i32) {
    %c0_i32 = arith.constant 0 : i32
    %c0_i32_0 = arith.constant 0 : i32
    %c0_i32_1 = arith.constant 0 : i32
    return %c0_i32, %c0_i32_0 : i32, i32
  }
  func.func @transform_6(%arg0: i32) -> (i32, i32) {
    %c0_i32 = arith.constant 0 : i32
    %c0_i32_0 = arith.constant 0 : i32
    %c0_i32_1 = arith.constant 0 : i32
    return %c0_i32, %c0_i32_0 : i32, i32
  }
  func.func @transform_7(%arg0: i32) -> (i32, i32) {
    %c0_i32 = arith.constant 0 : i32
    %c0_i32_0 = arith.constant 0 : i32
    return %arg0, %c0_i32 : i32, i32
  }
}

</mosaic_0001>

<bundles_post_ra>
// kernel: tpu_custom_call.1
= control target key start
LH: loop header
LB: loop body
LE: loop exit
PB: predicated region body
PF: predicated region fallthrough
CT: control target
= control target key end

     0   :  { %12 = vsyncpa [#allocation3], 0  ;;  %s886_s0 = inlined_call_operand.vmem [shape: f32[16,32], index: 0, kind: input, shape index: {}]   ;;  %s887_s1 = inlined_call_operand.vmem [shape: f32[1,32], index: 1, kind: input, shape index: {}]   ;;  %s888_s2 = inlined_call_operand.vmem [shape: f32[1,32], index: 2, kind: input, shape index: {}]   ;;  %s889_s3 = inlined_call_operand.vmem [shape: f32[32,16], index: 3, kind: input, shape index: {}]   ;;  %s890_s4 = inlined_call_operand.vmem [shape: f32[1,16], index: 4, kind: input, shape index: {}]   ;;  %s891_s5 = inlined_call_operand.vmem [shape: f32[16,32], index: 5, kind: input, shape index: {}]   ;;  %s892_s6 = inlined_call_operand.vmem [shape: f32[1,32], index: 6, kind: input, shape index: {}]   ;;  %s893_s7 = inlined_call_operand.hbm [shape: f32[16,32], index: 7, kind: output, shape index: {}]  }
   0x1   :  { %14 = vsyncpa [#allocation3 + $0x1], 0  ;;  %s752_s24 = smov 0   ;;  %s754_s25 = smov 0  }
   0x2   :  { %s756_s26 = smov 0   ;;  %s758_s27 = smov 0  }
   0x3 LB: > { %s773_s28 = sadd.s32 4294967295, %s706_s27   ;;  %s549_s29 = sadd.s32 4294967294, %s706_s27   ;;  %s706_s27 = sphi %s758_s27, %s899_s27   ;;  %s702_s26 = sphi %s756_s26, %s898_s26   ;;  %s698_s25 = sphi %s754_s25, %s897_s25   ;;  %s694_s24 = sphi %s752_s24, %s896_s24  }
   0x4   : > { %s777_s30 = sadd.s32 1, %s706_s27   ;;  %s179_s8 = sadd.s32 1, %s702_s26 }
   0x5   : > { %s176_s9 = ssub.s32 %s706_s27, %s777_s30  ;;  %p189_p0 = scmp.ne.s32.totalorder %s702_s26, %s698_s25 }
   0x6   : > { %p177_p1 = scmp.eq.s32.totalorder %s176_s9, 0  ;;  %p190_p2 = scmp.eq.s32.totalorder %s773_s28, 1 }
   0x7   : > { %p195_p3 = scmp.ne.s32.totalorder %s698_s25, %s694_s24  ;;  %p196_p4 = scmp.eq.s32.totalorder %s549_s29, 1 }
   0x8   : > { %s788_s10 = scalar_select %p177_p1, %s702_s26, %s179_s8  }
   0x9   : > { %p790_p5 = por %p190_p2, %p189_p0  ;;  %p794_p6 = por %p196_p4, %p195_p3 }
   0xa   : > { %p552_p7 = scmp.ge.s32.totalorder %s706_s27, 1  ;;  %p239_p8 = scmp.lt.s32.totalorder %s706_s27, 3 }
   0xc   : > { %p240_p9 = pnand %p552_p7, %p239_p8 }
   0xd   : > { %p270_p10 = scmp.lt.s32.totalorder (!%p240_p9), %s773_s28, 1  ;;  %vm275_vm0 = vcmask (!%p240_p9), 261120   ;;  %v306_v7 = vld [vmem:[%s889_s3] sm:$0xff] (!%p240_p9)  ;;  %v307_v8 = vld [vmem:[%s889_s3 + $0x8] sm:$0xff] (!%p240_p9)  ;;  %v308_v9 = vld [vmem:[%s889_s3 + $0x10] sm:$0xff] (!%p240_p9)  ;;  %v708_v10 = vmov (!%p240_p9), 0.0|0.0  }
   0xe   : > { %243 = sbr.rel (%p240_p9) target bundleno = 785 (0x311), region = 48  ;;  %591 = vmatprep.subr.bf16.mxu0 (!%p240_p9), %v708_v10  ;;  %v592_v11 = vpack.c.bf16 (!%p240_p9), %v307_v8, %v306_v7  ;;  %v309_v12 = vld [vmem:[%s889_s3 + $0x18] sm:$0xff] (!%p240_p9)  ;;  %vm709_vm1 = vmmov (!%p240_p9), 0   ;;  %v710_v13 = vmov (!%p240_p9), 0.0   ;;  %597 = vmatprep.subr.bf16.mxu1 (!%p240_p9), %v708_v10  ;;  %v555_v19 = vld [vmem:[%s887_s1] ss:$0 sm:$0xff] (!%p240_p9) }
   0xf   : > { %581 = vmatprep.mubr.msk.f32.mxu0 (!%p240_p9), %vm709_vm1, %v710_v13  ;;  %588 = vmatprep.mubr.msk.f32.mxu1 (!%p240_p9), %vm709_vm1, %v710_v13  ;;  %v595_v14 = vpack.c.bf16 (!%p240_p9), %v309_v12, %v308_v9  ;;  %v556_v21 = vld [vmem:[%s888_s2] ss:$0 sm:$0xff] (!%p240_p9)  ;;  %v392_v25 = vld [vmem:[%s891_s5 + $0x8] sm:$0xff] (!%p240_p9)  ;;  %vm400_vm2 = vcmask (!%p240_p9), 130048   ;;  %s267_s22 = sand.u32 (!%p240_p9), 1, %s698_s25   ;;  %s562_s9 = sshll.u32 (!%p240_p9), %s773_s28, 7 }
  0x10   : > { %593 = vmatpush3.bf16.msra.mxu0 (!%p240_p9), %v592_v11  ;;  %v391_v24 = vld [vmem:[%s891_s5] sm:$0xff] (!%p240_p9)  ;;  %s553_s23 = sshll.u32 (!%p240_p9), %s267_s22, 3  ;;  %s477_s18 = scalar_lea.sflag (!%p240_p9), [#allocation3], %s267_s22 }
  0x11   : > { %594 = vmatprep.subr.bf16.mxu0 (!%p240_p9), %v708_v10  ;;  %v598_v26 = vpack.c.bf16 (!%p240_p9), %v392_v25, %v391_v24  ;;  %v557_v27 = vld [vmem:[%s890_s4] ss:$0 sm:$0xff] (!%p240_p9) }
  0x12   : > { %v559_v32 = vld [vmem:[%s892_s6] ss:$0 sm:$0xff] (!%p240_p9) }
  0x13   : > { %599 = vmatpush3.bf16.msra.mxu1 (!%p240_p9), %v598_v26 }
  0x14   : > { %596 = vmatpush3.bf16.msra.mxu0 (!%p240_p9), %v595_v14 }
  0x15   : > { %s271_s13 = scalar_select %p270_p10, %s773_s28, 1 }
  0x16   : > { %s711_s28 = smov [#allocation2]  }
  0x17   : > { %s554_s14 = sshll.u32 %s271_s13, 3  ;;  %s269_s13 = scalar_lea.vmem [#allocation2], %s553_s23 }
  0x18   : > { %s273_s17 = scalar_lea.vmem %s886_s0, %s554_s14  ;;  %s490_s14 = sshll.u32 %s269_s13, 4  ;;  %s845_s14 = int_to_ptr.vmem [resolvable:$true] %s490_s14 }
  0x19   : > { %v274_v0 = vld [vmem:[%s273_s17] sm:$0xff]  ;;  %s843_s17 = scalar_lea.hbm %s893_s7, %s562_s9  ;;  %s644_s19 = scalar_lea.vmem %s845_s14, 128 }
  0x1a   : > { %v276_v1 = vsel %vm275_vm0, %v274_v0, 0.0  ;;  %p645_p11 = scmp.ne.s32.totalorder %s845_s14, %s644_s19  ;;  %s648_s20 = sshll.u32 %s711_s28, 4  ;;  %s649_s20 = int_to_ptr.vmem [resolvable:$false] %s648_s20 }
  0x1b   : > { %277 = vadd.xlane.f32.xlu0 %v276_v1  ;;  %s650_s21 = scalar_lea.vmem %s649_s20, 256  ;;  %p651_p0 = scmp.lt.s32.totalorder %s845_s14, %s649_s20 }
  0x1c   : > { %p646_p12 = pnand %p645_p11, %p790_p5  ;;  %p652_p1 = scmp.lt.s32.totalorder %s650_s21, %s644_s19 }
  0x1e   : > { %p647_p13 = pneg %p646_p12  ;;  %p653_p2 = por %p652_p1, %p651_p0 }
  0x20   : > { %p654_p3 = pnand %p653_p2, %p647_p13 }
  0xa8   : > { %v278_v2 = vpop.xlane.xlu0 %277 }
  0xa9   : > { %v280_v3 = vmul.f32 0.03125, %v278_v2 }
  0xab   : > { %v281_v4 = vsub.f32 %v274_v0, %v280_v3 }
  0xad   : > { %v282_v5 = vmul.f32 %v281_v4, %v281_v4 }
  0xaf   : > { %v283_v6 = vsel %vm275_vm0, %v282_v5, 0.0 }
  0xb0   : > { %284 = vadd.xlane.f32.xlu0 %v283_v6 }
 0x13d   : > { %v285_v15 = vpop.xlane.xlu0 %284 }
 0x13e   : > { %v286_v16 = vmul.f32 0.03125, %v285_v15 }
 0x140   : > { %v287_v17 = vadd.f32 1e-05, %v286_v16 }
 0x142   : > { %642 = vrsqrt.f32 %v287_v17 }
 0x14c   : > { %v643_v18 = vpop.eup %642 }
 0x14d   : > { %v289_v20 = vmul.f32 %v643_v18, %v281_v4 }
 0x14f   : > { %v297_v22 = vmul.f32 %v555_v19, %v289_v20 }
 0x151   : > { %v305_v23 = vadd.f32 %v556_v21, %v297_v22 }
 0x153   : > { %582 = vmatmul.mubr.msk.f32.vlgmr.msra.gmra.mrb[0].mxu0 %vm275_vm0, %v305_v23 }
 0x226   : > { %v386_v28 = vpop.f32.mrb[0].mxu0 }
 0x227   : > { %v387_v29 = vadd.f32 %v557_v27, %v386_v28  ;;  %v583_v30 = vpop.f32.mrb[1].mxu0 }
 0x229   : > { %v390_v31 = vmax.f32 %v387_v29, 0.0 }
 0x22b   : > { %589 = vmatmul.mubr.msk.f32.vlgmr.msra.gmra.mrb[0].mxu1 %vm400_vm2, %v390_v31 }
 0x2fe   : > { %v470_v33 = vpop.f32.mrb[0].mxu1 }
 0x2ff   : > { %v471_v34 = vadd.f32 %v559_v32, %v470_v33  ;;  %v590_v35 = vpop.f32.mrb[1].mxu1 }
 0x301   : > { %v474_v36 = vadd.f32 %v471_v34, %v274_v0 }
 0x303   : > { %475 = vst.msk [vmem:[%s269_s13] sm:$0xff] %vm275_vm0, %v474_v36 }
 0x304   : > { %657 = shalt.err (!%p654_p3)
}
 0x305   : > { %s658_s22 = scalar_lea.hbm %s843_s17, 128  ;;  %s662_s8 = scalar_lea.hbm %s893_s7, 256 }
 0x306   : > { %p659_p4 = scmp.ne.s32.totalorder %s843_s17, %s658_s22  ;;  %p663_p9 = scmp.lt.u32.totalorder %s843_s17, %s893_s7 }
 0x307   : > { %p664_p10 = scmp.lt.u32.totalorder %s662_s8, %s658_s22  ;;  %p666_p12 = scmp.lt.u32.totalorder %s658_s22, %s843_s17 }
 0x308   : > { %p660_p7 = pnand %p659_p4, %p790_p5 }
 0x309   : > { %p665_p11 = por %p664_p10, %p663_p9 }
 0x30a   : > { %p661_p8 = pneg %p660_p7 }
 0x30b   : > { %p667_p13 = por %p666_p12, %p665_p11 }
 0x30d   : > { %p668_p0 = pnand %p667_p13, %p661_p8 }
 0x30f   : > { %671 = shalt.err (!%p668_p0)
}
 0x310   : > { %600 = dma.vmem_to_hbm [thread:$0]  (%p790_p5), %s845_s14, 128, %s843_s17, %s477_s18  }
 0x311 PF: > { %p606_p1 = scmp.ge.s32.totalorder %s706_s27, 2  ;;  %s502_s15 = sand.u32 1, %s694_s24  }
 0x312   : > { %s503_s16 = scalar_lea.sflag [#allocation3], %s502_s15 }
 0x313   : > { %p603_p2 = pnand %p606_p1, %p794_p6 }
 0x315   : > { %689 = dma.done.wait (!%p603_p2), %s503_s16, 128  }
 0x316   : > { %691 = vsyncadd (!%p603_p2), %s503_s16, 4294967168  ;;  %p17_p3 = scmp.ge.s32.totalorder %s777_s30, 4   ;;  %s896_s24 = smov %s698_s25 }
 0x317   : > { %s897_s25 = smov %s702_s26  ;;  %s898_s26 = smov %s788_s10 }
 0x318   : > { %s899_s27 = smov %s777_s30  ;;  %19 = sbr.rel (!%p17_p3) target bundleno = 3 (0x3), region = 83 }
 0x31f   :  { %508 = vsyncpa [#allocation3], 1 }
 0x320   :  { %510 = vsyncpa [#allocation3 + $0x1], 1 }

</bundles_post_ra>
